<compile_context>
chip_gen: v7x
topology: tpu7x:2x2x1
jax: 0.10.0
libtpu: 0.0.40
codegen_flags: <defaults>
</compile_context>

<pallas_src>
import functools

import jax
import jax.numpy as jnp
from jax.experimental import pallas as pl
from jax.experimental.pallas import tpu as pltpu

C_PAD = 128          # lane-dense padded output-channel width for ConvBlocks
IN_EPS = 1e-5        # torch.nn.InstanceNorm2d default eps


def _round_up(x, m):
    return (x + m - 1) // m * m


def _vmem_limit_bytes():
    """Scoped VMEM budget: ~3/4 of capacity, clamped to [32, 96] MiB.

    v5e/v6e: 128 MiB physical -> 96 MiB (default scoped limit is far lower).
    v7x: 64 MiB per TensorCore -> 48 MiB.
    """
    try:
        cap = int(pltpu.get_tpu_info().vmem_capacity_bytes)
    except Exception:
        cap = 64 * 1024 * 1024
    return int(min(96 * 1024 * 1024, max(32 * 1024 * 1024, (cap * 3) // 4)))


def _samples_per_block(n, rows):
    """Fold batch samples into one GEMM block when the per-sample spatial
    extent is small (fills the MXU, fewer ~0.35us grid steps), while keeping
    >= 2 parallel grid blocks whenever the batch allows (v7x has 2 TCs)."""
    spb = 1
    for d in range(2, n + 1):
        if n % d:
            continue
        if rows * d > 512:      # keep block M modest (VMEM / pipeline friendly)
            break
        if n // d < 2:          # would leave a v7x TensorCore idle
            break
        spb = d
    return spb


# ----------------------------- Pallas kernel --------------------------------

def _convblock_kernel(x_ref, w_ref, o_ref, *, rows, spb):
    """Fused conv-GEMM + InstanceNorm (biased var, one pass) + ReLU.

    Block layout (one grid step == `spb` batch samples):
      x_ref : [spb*rows, K_pad]  bf16 im2col patches (K zero-padded to 128x)
      w_ref : [K_pad, 128]       bf16 packed weights (Cout zero-padded to 128)
      o_ref : [spb*rows, 128]    bf16 normalized + ReLU activations (lane-dense)

    The conv bias is intentionally omitted: InstanceNorm subtracts the
    per-(sample, channel) mean, which cancels a per-channel constant exactly.
    """
    acc = jnp.dot(x_ref[...], w_ref[...], preferred_element_type=jnp.float32)
    inv_rows = 1.0 / rows
    for s in range(spb):  # static unroll over samples folded into this block
        a = acc if spb == 1 else acc[s * rows:(s + 1) * rows, :]
        mean = jnp.sum(a, axis=0, keepdims=True) * inv_rows
        ex2 = jnp.sum(a * a, axis=0, keepdims=True) * inv_rows
        var = jnp.maximum(ex2 - mean * mean, 0.0)
        y = (a - mean) * jax.lax.rsqrt(var + IN_EPS)
        y = jnp.maximum(y, 0.0).astype(o_ref.dtype)
        if spb == 1:
            o_ref[...] = y
        else:
            o_ref[s * rows:(s + 1) * rows, :] = y


def _convblock_gemm(patches, w_packed, n_samples, rows_per_sample):
    M, k_pad = patches.shape
    spb = _samples_per_block(n_samples, rows_per_sample)
    blk_rows = spb * rows_per_sample
    n_blocks = n_samples // spb
    kernel = functools.partial(_convblock_kernel, rows=rows_per_sample, spb=spb)
    return pl.pallas_call(
        kernel,
        out_shape=jax.ShapeDtypeStruct((M, C_PAD), jnp.bfloat16),
        grid=(n_blocks,),
        in_specs=[
            pl.BlockSpec((blk_rows, k_pad), lambda n: (n, 0)),
            pl.BlockSpec((k_pad, C_PAD), lambda n: (0, 0)),
        ],
        out_specs=pl.BlockSpec((blk_rows, C_PAD), lambda n: (n, 0)),
        compiler_params=pltpu.CompilerParams(
            dimension_semantics=("parallel",),
            vmem_limit_bytes=_vmem_limit_bytes(),
        ),
    )(patches, w_packed)


# ------------------------------- JAX glue ------------------------------------

def _im2col_nhwc(xp, kh, kw, stride, k_pad=None):
    """xp: [N, Hp, Wp, C] (already padded) -> [N*OH*OW, kh*kw*C] patches.

    K index order is (kh, kw, cin), matching the packed-weight layout below.
    Optionally zero-pads K up to `k_pad` (unmasked lane loads in the kernel).
    """
    N, Hp, Wp, C = xp.shape
    OH = (Hp - kh) // stride + 1
    OW = (Wp - kw) // stride + 1
    cols = []
    for i in range(kh):
        for j in range(kw):
            cols.append(xp[:, i:i + stride * OH:stride,
                           j:j + stride * OW:stride, :])
    p = jnp.stack(cols, axis=3).reshape(N * OH * OW, kh * kw * C)
    if k_pad is not None and k_pad > p.shape[1]:
        p = jnp.pad(p, ((0, 0), (0, k_pad - p.shape[1])))
    return p, OH, OW


def _pack_block_weight(w):
    """w: [Cout, Cin, kh, kw] -> bf16 [K_pad, 128] (K and Cout zero-padded)."""
    cout, cin, kh, kw = w.shape
    k = kh * kw * cin
    k_pad = _round_up(k, 128)
    wm = jnp.transpose(w, (2, 3, 1, 0)).reshape(k, cout)
    wm = jnp.pad(wm, ((0, k_pad - k), (0, C_PAD - cout)))
    return wm.astype(jnp.bfloat16)


def _pack_final_weight(w):
    """w: [1, Cin, kh, kw] -> bf16 [kh*kw*Cin, 1] (no padding needed)."""
    cout, cin, kh, kw = w.shape
    wm = jnp.transpose(w, (2, 3, 1, 0)).reshape(kh * kw * cin, cout)
    return wm.astype(jnp.bfloat16)


def init_critic_params(key, in_channels, num_layers, no_of_features):
    """PyTorch-shaped parameters for Critic(in_channels, num_layers, F)."""
    chans = [(in_channels, no_of_features)]
    for i in range(num_layers - 1):
        chans.append((no_of_features * 2 ** i, no_of_features * 2 ** (i + 1)))
    keys = jax.random.split(key, len(chans) + 1)

    params = {"blocks": []}
    for idx, (ci, co) in enumerate(chans):
        k1, k2 = jax.random.split(keys[idx])
        params["blocks"].append({
            "w": jax.random.normal(k1, (co, ci, 4, 4), jnp.float32) * 0.05,
            # Conv bias kept for PyTorch state-dict fidelity; it is exactly
            # cancelled by InstanceNorm so it is never packed / used.
            "b": jax.random.normal(k2, (co,), jnp.float32) * 0.05,
        })
    k1, k2 = jax.random.split(keys[-1])
    co_last = chans[-1][1]
    params["final"] = {
        "w": jax.random.normal(k1, (1, co_last, 4, 4), jnp.float32) * 0.05,
        "b": jax.random.normal(k2, (1,), jnp.float32) * 0.05,
    }
    return params


def pack_critic_params(params):
    """One-time packing: kernel weight layouts + static per-block Cout tuple."""
    packed = {"blocks": [], "final": None}
    couts = []
    for blk in params["blocks"]:
        packed["blocks"].append({"w": _pack_block_weight(blk["w"])})
        couts.append(int(blk["w"].shape[0]))
    packed["final"] = {"w": _pack_final_weight(params["final"]["w"]),
                       "b": params["final"]["b"].astype(jnp.float32)}
    return packed, tuple(couts)


# ------------------------------ Critic forward -------------------------------

def critic_forward(packed, x_nchw, couts):
    """Critic forward. x_nchw: [N, C, H, W] f32 -> [N, 1, OHf, OWf] f32."""
    n = x_nchw.shape[0]
    x = jnp.transpose(x_nchw, (0, 2, 3, 1))            # NHWC, once

    # ConvBlocks: Conv2d(k=4, s=2, p=1, reflect) + InstanceNorm + ReLU (fused)
    for i, blk in enumerate(packed["blocks"]):
        xb = x if x.dtype == jnp.bfloat16 else x.astype(jnp.bfloat16)
        xp = jnp.pad(xb, ((0, 0), (1, 1), (1, 1), (0, 0)), mode="reflect")
        k_pad = blk["w"].shape[0]
        patches, OH, OW = _im2col_nhwc(xp, 4, 4, 2, k_pad=k_pad)
        out = _convblock_gemm(patches, blk["w"], n, OH * OW)
        x = out.reshape(n, OH, OW, C_PAD)[..., :couts[i]]   # bf16, lane-dense

    # Final Conv2d(C -> 1, k=4, s=1, p=0) with bias: a tiny GEMM, done as a
    # plain XLA dot per the perf review (a dedicated pallas_call is pure
    # launch/pipeline fixed cost and a 128-padded output writes 128x the data).
    patches, OHf, OWf = _im2col_nhwc(x, 4, 4, 1)
    out = jnp.dot(patches, packed["final"]["w"],
                  preferred_element_type=jnp.float32) + packed["final"]["b"]
    out = out.reshape(n, OHf, OWf, 1)
    return jnp.transpose(out, (0, 3, 1, 2))            # back to NCHW, once


# ---------------------------------- main -------------------------------------

if __name__ == "__main__":
    key = jax.random.PRNGKey(0)
    k_param, k_x = jax.random.split(key)

    B, IN_CH, H, W = 2, 3, 32, 32
    NUM_LAYERS, FEAT = 3, 8        # 32 -> 16 -> 8 -> 4 spatially, then k=4 -> 1

    params = init_critic_params(k_param, IN_CH, NUM_LAYERS, FEAT)
    packed, couts = pack_critic_params(params)
    x = jax.random.normal(k_x, (B, IN_CH, H, W), jnp.float32)

    fwd = jax.jit(critic_forward, static_argnums=(2,))
    out = jax.block_until_ready(fwd(packed, x, couts))

    assert out.shape == (B, 1, 1, 1), out.shape
    assert out.dtype == jnp.float32
    assert bool(jnp.all(jnp.isfinite(out)))
    print("KERNEL_OK")
</pallas_src>

<mosaic_0001>
module attributes {stable_mosaic.version = 11 : i64} {
  func.func @_convblock_kernel(%arg0: i32, %arg1: memref<256x128xbf16, #tpu.memory_space<vmem>>, %arg2: memref<128x128xbf16, #tpu.memory_space<vmem>>, %arg3: memref<256x128xbf16, #tpu.memory_space<vmem>>) attributes {dimension_semantics = [#tpu.dimension_semantics<parallel>], iteration_bounds = array<i64: 2>, scalar_prefetch = 0 : i64, scratch_operands = 0 : i64, tpu.core_type = #tpu.core_type<tc>, window_params = [{transform_indices = @transform_0, window_bounds = array<i64: 256, 128>}, {pipeline_mode = #tpu.pipeline_mode<synchronous>, transform_indices = @transform_1, window_bounds = array<i64: 128, 128>}, {transform_indices = @transform_2, window_bounds = array<i64: 256, 128>}]} {
    %c0 = arith.constant 0 : index
    %c0_0 = arith.constant 0 : index
    %0 = vector.load %arg1[%c0, %c0_0] : memref<256x128xbf16, #tpu.memory_space<vmem>>, vector<256x128xbf16>
    %c0_1 = arith.constant 0 : index
    %c0_2 = arith.constant 0 : index
    %1 = vector.load %arg2[%c0_1, %c0_2] : memref<128x128xbf16, #tpu.memory_space<vmem>>, vector<128x128xbf16>
    %cst = arith.constant dense<0.000000e+00> : vector<256x128xf32>
    %2 = tpu.matmul %0, %1, %cst {dimension_numbers = #tpu.dot_dimension_numbers<[1], [0], [0], [1], [0, 0, 1, 1], [], []>} : vector<256x128xbf16>, vector<128x128xbf16>, vector<256x128xf32> -> vector<256x128xf32>
    %cst_3 = arith.constant dense<0.000000e+00> : vector<128xf32>
    %3 = vector.multi_reduction <add>, %2, %cst_3 [0] : vector<256x128xf32> to vector<128xf32>
    %4 = vector.shape_cast %3 : vector<128xf32> to vector<1x128xf32>
    %cst_4 = arith.constant 3.906250e-03 : f32
    %5 = vector.broadcast %cst_4 : f32 to vector<1x128xf32>
    %6 = arith.mulf %4, %5 : vector<1x128xf32>
    %7 = arith.mulf %2, %2 : vector<256x128xf32>
    %cst_5 = arith.constant dense<0.000000e+00> : vector<128xf32>
    %8 = vector.multi_reduction <add>, %7, %cst_5 [0] : vector<256x128xf32> to vector<128xf32>
    %9 = vector.shape_cast %8 : vector<128xf32> to vector<1x128xf32>
    %cst_6 = arith.constant 3.906250e-03 : f32
    %10 = vector.broadcast %cst_6 : f32 to vector<1x128xf32>
    %11 = arith.mulf %9, %10 : vector<1x128xf32>
    %12 = arith.mulf %6, %6 : vector<1x128xf32>
    %13 = arith.subf %11, %12 : vector<1x128xf32>
    %cst_7 = arith.constant 0.000000e+00 : f32
    %14 = vector.broadcast %cst_7 : f32 to vector<1x128xf32>
    %15 = arith.maximumf %13, %14 : vector<1x128xf32>
    %16 = vector.broadcast %6 : vector<1x128xf32> to vector<256x128xf32>
    %17 = arith.subf %2, %16 : vector<256x128xf32>
    %cst_8 = arith.constant 9.99999974E-6 : f32
    %18 = vector.broadcast %cst_8 : f32 to vector<1x128xf32>
    %19 = arith.addf %15, %18 : vector<1x128xf32>
    %20 = math.rsqrt %19 : vector<1x128xf32>
    %21 = vector.broadcast %20 : vector<1x128xf32> to vector<256x128xf32>
    %22 = arith.mulf %17, %21 : vector<256x128xf32>
    %cst_9 = arith.constant 0.000000e+00 : f32
    %23 = vector.broadcast %cst_9 : f32 to vector<256x128xf32>
    %24 = arith.maximumf %22, %23 : vector<256x128xf32>
    %25 = arith.truncf %24 : vector<256x128xf32> to vector<256x128xbf16>
    %c0_10 = arith.constant 0 : index
    %c0_11 = arith.constant 0 : index
    %26 = vector.load %arg3[%c0_10, %c0_11] : memref<256x128xbf16, #tpu.memory_space<vmem>>, vector<256x128xbf16>
    tpu.vector_store %arg3[%c0_10, %c0_11], %25 {strides = array<i32>} : memref<256x128xbf16, #tpu.memory_space<vmem>>, vector<256x128xbf16>,
    return
  }
  func.func @transform_0(%arg0: i32) -> (i32, i32) {
    %c0_i32 = arith.constant 0 : i32
    %c0_i32_0 = arith.constant 0 : i32
    return %arg0, %c0_i32 : i32, i32
  }
  func.func @transform_1(%arg0: i32) -> (i32, i32) {
    %c0_i32 = arith.constant 0 : i32
    %c0_i32_0 = arith.constant 0 : i32
    %c0_i32_1 = arith.constant 0 : i32
    return %c0_i32, %c0_i32_0 : i32, i32
  }
  func.func @transform_2(%arg0: i32) -> (i32, i32) {
    %c0_i32 = arith.constant 0 : i32
    %c0_i32_0 = arith.constant 0 : i32
    return %arg0, %c0_i32 : i32, i32
  }
}

module attributes {stable_mosaic.version = 11 : i64} {
  func.func @_convblock_kernel(%arg0: i32, %arg1: memref<64x128xbf16, #tpu.memory_space<vmem>>, %arg2: memref<128x128xbf16, #tpu.memory_space<vmem>>, %arg3: memref<64x128xbf16, #tpu.memory_space<vmem>>) attributes {dimension_semantics = [#tpu.dimension_semantics<parallel>], iteration_bounds = array<i64: 2>, scalar_prefetch = 0 : i64, scratch_operands = 0 : i64, tpu.core_type = #tpu.core_type<tc>, window_params = [{transform_indices = @transform_0, window_bounds = array<i64: 64, 128>}, {pipeline_mode = #tpu.pipeline_mode<synchronous>, transform_indices = @transform_1, window_bounds = array<i64: 128, 128>}, {transform_indices = @transform_2, window_bounds = array<i64: 64, 128>}]} {
    %c0 = arith.constant 0 : index
    %c0_0 = arith.constant 0 : index
    %0 = vector.load %arg1[%c0, %c0_0] : memref<64x128xbf16, #tpu.memory_space<vmem>>, vector<64x128xbf16>
    %c0_1 = arith.constant 0 : index
    %c0_2 = arith.constant 0 : index
    %1 = vector.load %arg2[%c0_1, %c0_2] : memref<128x128xbf16, #tpu.memory_space<vmem>>, vector<128x128xbf16>
    %cst = arith.constant dense<0.000000e+00> : vector<64x128xf32>
    %2 = tpu.matmul %0, %1, %cst {dimension_numbers = #tpu.dot_dimension_numbers<[1], [0], [0], [1], [0, 0, 1, 1], [], []>} : vector<64x128xbf16>, vector<128x128xbf16>, vector<64x128xf32> -> vector<64x128xf32>
    %cst_3 = arith.constant dense<0.000000e+00> : vector<128xf32>
    %3 = vector.multi_reduction <add>, %2, %cst_3 [0] : vector<64x128xf32> to vector<128xf32>
    %4 = vector.shape_cast %3 : vector<128xf32> to vector<1x128xf32>
    %cst_4 = arith.constant 1.562500e-02 : f32
    %5 = vector.broadcast %cst_4 : f32 to vector<1x128xf32>
    %6 = arith.mulf %4, %5 : vector<1x128xf32>
    %7 = arith.mulf %2, %2 : vector<64x128xf32>
    %cst_5 = arith.constant dense<0.000000e+00> : vector<128xf32>
    %8 = vector.multi_reduction <add>, %7, %cst_5 [0] : vector<64x128xf32> to vector<128xf32>
    %9 = vector.shape_cast %8 : vector<128xf32> to vector<1x128xf32>
    %cst_6 = arith.constant 1.562500e-02 : f32
    %10 = vector.broadcast %cst_6 : f32 to vector<1x128xf32>
    %11 = arith.mulf %9, %10 : vector<1x128xf32>
    %12 = arith.mulf %6, %6 : vector<1x128xf32>
    %13 = arith.subf %11, %12 : vector<1x128xf32>
    %cst_7 = arith.constant 0.000000e+00 : f32
    %14 = vector.broadcast %cst_7 : f32 to vector<1x128xf32>
    %15 = arith.maximumf %13, %14 : vector<1x128xf32>
    %16 = vector.broadcast %6 : vector<1x128xf32> to vector<64x128xf32>
    %17 = arith.subf %2, %16 : vector<64x128xf32>
    %cst_8 = arith.constant 9.99999974E-6 : f32
    %18 = vector.broadcast %cst_8 : f32 to vector<1x128xf32>
    %19 = arith.addf %15, %18 : vector<1x128xf32>
    %20 = math.rsqrt %19 : vector<1x128xf32>
    %21 = vector.broadcast %20 : vector<1x128xf32> to vector<64x128xf32>
    %22 = arith.mulf %17, %21 : vector<64x128xf32>
    %cst_9 = arith.constant 0.000000e+00 : f32
    %23 = vector.broadcast %cst_9 : f32 to vector<64x128xf32>
    %24 = arith.maximumf %22, %23 : vector<64x128xf32>
    %25 = arith.truncf %24 : vector<64x128xf32> to vector<64x128xbf16>
    %c0_10 = arith.constant 0 : index
    %c0_11 = arith.constant 0 : index
    %26 = vector.load %arg3[%c0_10, %c0_11] : memref<64x128xbf16, #tpu.memory_space<vmem>>, vector<64x128xbf16>
    tpu.vector_store %arg3[%c0_10, %c0_11], %25 {strides = array<i32>} : memref<64x128xbf16, #tpu.memory_space<vmem>>, vector<64x128xbf16>,
    return
  }
  func.func @transform_0(%arg0: i32) -> (i32, i32) {
    %c0_i32 = arith.constant 0 : i32
    %c0_i32_0 = arith.constant 0 : i32
    return %arg0, %c0_i32 : i32, i32
  }
  func.func @transform_1(%arg0: i32) -> (i32, i32) {
    %c0_i32 = arith.constant 0 : i32
    %c0_i32_0 = arith.constant 0 : i32
    %c0_i32_1 = arith.constant 0 : i32
    return %c0_i32, %c0_i32_0 : i32, i32
  }
  func.func @transform_2(%arg0: i32) -> (i32, i32) {
    %c0_i32 = arith.constant 0 : i32
    %c0_i32_0 = arith.constant 0 : i32
    return %arg0, %c0_i32 : i32, i32
  }
}

module attributes {stable_mosaic.version = 11 : i64} {
  func.func @_convblock_kernel(%arg0: i32, %arg1: memref<16x256xbf16, #tpu.memory_space<vmem>>, %arg2: memref<256x128xbf16, #tpu.memory_space<vmem>>, %arg3: memref<16x128xbf16, #tpu.memory_space<vmem>>) attributes {dimension_semantics = [#tpu.dimension_semantics<parallel>], iteration_bounds = array<i64: 2>, scalar_prefetch = 0 : i64, scratch_operands = 0 : i64, tpu.core_type = #tpu.core_type<tc>, window_params = [{transform_indices = @transform_0, window_bounds = array<i64: 16, 256>}, {pipeline_mode = #tpu.pipeline_mode<synchronous>, transform_indices = @transform_1, window_bounds = array<i64: 256, 128>}, {transform_indices = @transform_2, window_bounds = array<i64: 16, 128>}]} {
    %c0 = arith.constant 0 : index
    %c0_0 = arith.constant 0 : index
    %0 = vector.load %arg1[%c0, %c0_0] : memref<16x256xbf16, #tpu.memory_space<vmem>>, vector<16x256xbf16>
    %c0_1 = arith.constant 0 : index
    %c0_2 = arith.constant 0 : index
    %1 = vector.load %arg2[%c0_1, %c0_2] : memref<256x128xbf16, #tpu.memory_space<vmem>>, vector<256x128xbf16>
    %cst = arith.constant dense<0.000000e+00> : vector<16x128xf32>
    %2 = tpu.matmul %0, %1, %cst {dimension_numbers = #tpu.dot_dimension_numbers<[1], [0], [0], [1], [0, 0, 1, 1], [], []>} : vector<16x256xbf16>, vector<256x128xbf16>, vector<16x128xf32> -> vector<16x128xf32>
    %cst_3 = arith.constant dense<0.000000e+00> : vector<128xf32>
    %3 = vector.multi_reduction <add>, %2, %cst_3 [0] : vector<16x128xf32> to vector<128xf32>
    %4 = vector.shape_cast %3 : vector<128xf32> to vector<1x128xf32>
    %cst_4 = arith.constant 6.250000e-02 : f32
    %5 = vector.broadcast %cst_4 : f32 to vector<1x128xf32>
    %6 = arith.mulf %4, %5 : vector<1x128xf32>
    %7 = arith.mulf %2, %2 : vector<16x128xf32>
    %cst_5 = arith.constant dense<0.000000e+00> : vector<128xf32>
    %8 = vector.multi_reduction <add>, %7, %cst_5 [0] : vector<16x128xf32> to vector<128xf32>
    %9 = vector.shape_cast %8 : vector<128xf32> to vector<1x128xf32>
    %cst_6 = arith.constant 6.250000e-02 : f32
    %10 = vector.broadcast %cst_6 : f32 to vector<1x128xf32>
    %11 = arith.mulf %9, %10 : vector<1x128xf32>
    %12 = arith.mulf %6, %6 : vector<1x128xf32>
    %13 = arith.subf %11, %12 : vector<1x128xf32>
    %cst_7 = arith.constant 0.000000e+00 : f32
    %14 = vector.broadcast %cst_7 : f32 to vector<1x128xf32>
    %15 = arith.maximumf %13, %14 : vector<1x128xf32>
    %16 = vector.broadcast %6 : vector<1x128xf32> to vector<16x128xf32>
    %17 = arith.subf %2, %16 : vector<16x128xf32>
    %cst_8 = arith.constant 9.99999974E-6 : f32
    %18 = vector.broadcast %cst_8 : f32 to vector<1x128xf32>
    %19 = arith.addf %15, %18 : vector<1x128xf32>
    %20 = math.rsqrt %19 : vector<1x128xf32>
    %21 = vector.broadcast %20 : vector<1x128xf32> to vector<16x128xf32>
    %22 = arith.mulf %17, %21 : vector<16x128xf32>
    %cst_9 = arith.constant 0.000000e+00 : f32
    %23 = vector.broadcast %cst_9 : f32 to vector<16x128xf32>
    %24 = arith.maximumf %22, %23 : vector<16x128xf32>
    %25 = arith.truncf %24 : vector<16x128xf32> to vector<16x128xbf16>
    %c0_10 = arith.constant 0 : index
    %c0_11 = arith.constant 0 : index
    %26 = vector.load %arg3[%c0_10, %c0_11] : memref<16x128xbf16, #tpu.memory_space<vmem>>, vector<16x128xbf16>
    tpu.vector_store %arg3[%c0_10, %c0_11], %25 {strides = array<i32>} : memref<16x128xbf16, #tpu.memory_space<vmem>>, vector<16x128xbf16>,
    return
  }
  func.func @transform_0(%arg0: i32) -> (i32, i32) {
    %c0_i32 = arith.constant 0 : i32
    %c0_i32_0 = arith.constant 0 : i32
    return %arg0, %c0_i32 : i32, i32
  }
  func.func @transform_1(%arg0: i32) -> (i32, i32) {
    %c0_i32 = arith.constant 0 : i32
    %c0_i32_0 = arith.constant 0 : i32
    %c0_i32_1 = arith.constant 0 : i32
    return %c0_i32, %c0_i32_0 : i32, i32
  }
  func.func @transform_2(%arg0: i32) -> (i32, i32) {
    %c0_i32 = arith.constant 0 : i32
    %c0_i32_0 = arith.constant 0 : i32
    return %arg0, %c0_i32 : i32, i32
  }
}

</mosaic_0001>

<bundles_post_ra>
// kernel: critic_forward.3
= control target key start
LH: loop header
LB: loop body
LE: loop exit
PB: predicated region body
PF: predicated region fallthrough
CT: control target
= control target key end

     0   :  { %s1265_s9 = smov 0   ;;  %s1598_s0 = inlined_call_operand.vmem [shape: bf16[512,128], index: 0, kind: input, shape index: {}]   ;;  %s1599_s1 = inlined_call_operand.vmem [shape: bf16[128,128], index: 1, kind: input, shape index: {}]   ;;  %s1600_s2 = inlined_call_operand.vmem [shape: bf16[512,128], index: 2, kind: output, shape index: {}]  }
   0x1 LB: > { %s926_s10 = sadd.s32 4294967295, %s1248_s9   ;;  %p930_p0 = scmp.ge.s32.totalorder %s1248_s9, 1  ;;  %s1248_s9 = sphi %s1265_s9, %s12_s9  }
   0x2   : > { %p113_p1 = scmp.lt.s32.totalorder %s1248_s9, 3 }
   0x4   : > { %p114_p2 = pnand %p930_p0, %p113_p1 }
   0x5   : > { %v1216_v0 = vld [vmem:[%s1599_s1] sm:$0xff] (!%p114_p2)   ;;  %s931_s13 = sshll.u32 (!%p114_p2), %s926_s10, 5  ;;  %v1217_v1 = vld [vmem:[%s1599_s1 + $0x8] sm:$0xff] (!%p114_p2)   ;;  %v1218_v2 = vld [vmem:[%s1599_s1 + $0x10] sm:$0xff] (!%p114_p2)  }
   0x6   : > { %117 = sbr.rel (%p114_p2) target bundleno = 377 (0x179), region = 28  ;;  %p136_p3 = scmp.lt.s32.totalorder (!%p114_p2), %s931_s13, 63  ;;  %1144 = vmatprep.subr.bf16.mxu0 (!%p114_p2), %v1216_v0  ;;  %1192 = vmatprep.subr.bf16.mxu1 (!%p114_p2), %v1216_v0  ;;  %v1219_v3 = vld [vmem:[%s1599_s1 + $0x18] sm:$0xff] (!%p114_p2)   ;;  %v1220_v5 = vld [vmem:[%s1599_s1 + $0x20] sm:$0xff] (!%p114_p2)   ;;  %v1221_v6 = vld [vmem:[%s1599_s1 + $0x28] sm:$0xff] (!%p114_p2)  }
   0x7   : > { %1145 = vmatpush3.bf16.msra.mxu0 (!%p114_p2), %v1216_v0  ;;  %1200 = vmatpush3.bf16.msra.mxu1 (!%p114_p2), %v1216_v0  ;;  %v1222_v8 = vld [vmem:[%s1599_s1 + $0x30] sm:$0xff] (!%p114_p2)   ;;  %v1223_v9 = vld [vmem:[%s1599_s1 + $0x38] sm:$0xff] (!%p114_p2)  }
   0x8   : > { %1146 = vmatprep.subr.bf16.mxu0 (!%p114_p2), %v1217_v1  ;;  %1193 = vmatprep.subr.bf16.mxu1 (!%p114_p2), %v1217_v1 }
   0xb   : > { %1147 = vmatpush3.bf16.msra.mxu0 (!%p114_p2), %v1217_v1  ;;  %1201 = vmatpush3.bf16.msra.mxu1 (!%p114_p2), %v1217_v1 }
   0xc   : > { %1148 = vmatprep.subr.bf16.mxu0 (!%p114_p2), %v1218_v2  ;;  %1194 = vmatprep.subr.bf16.mxu1 (!%p114_p2), %v1218_v2 }
   0xd   : > { %s1602_s13 = smov (!%p136_p3, %s931_s13), 63 }
   0xe   : > { %s932_s18 = sshll.u32 %s1602_s13, 2 }
   0xf   : > { %s1290_s21 = scalar_lea.vmem %s1598_s0, %s932_s18  ;;  %1149 = vmatpush3.bf16.msra.mxu0 %v1218_v2  ;;  %1202 = vmatpush3.bf16.msra.mxu1 %v1218_v2  ;;  %s1577_s6 = scalar_lea.vmem %s1600_s2, %s932_s18 }
  0x10   : > { %v1224_v4 = vld [vmem:[%s1290_s21] sm:$0xff]   ;;  %1150 = vmatprep.subr.bf16.mxu0 %v1219_v3  ;;  %1195 = vmatprep.subr.bf16.mxu1 %v1219_v3  ;;  %v1225_v10 = vld [vmem:[%s1290_s21 + $0x8] sm:$0xff]   ;;  %v1226_v12 = vld [vmem:[%s1290_s21 + $0x10] sm:$0xff]  }
  0x11   : > { %1160 = vmatprep.mubr.bf16.mxu0 %v1224_v4  ;;  %v1232_v7 = vld [vmem:[%s1290_s21 + $0x40] sm:$0xff]   ;;  %v1233_v11 = vld [vmem:[%s1290_s21 + $0x48] sm:$0xff]   ;;  %v1234_v13 = vld [vmem:[%s1290_s21 + $0x50] sm:$0xff]  }
  0x12   : > { %1176 = vmatprep.mubr.bf16.mxu1 %v1232_v7  ;;  %v1227_v14 = vld [vmem:[%s1290_s21 + $0x18] sm:$0xff]   ;;  %v1228_v16 = vld [vmem:[%s1290_s21 + $0x20] sm:$0xff]   ;;  %v1229_v18 = vld [vmem:[%s1290_s21 + $0x28] sm:$0xff]  }
  0x13   : > { %1151 = vmatpush3.bf16.msra.mxu0 %v1219_v3  ;;  %1203 = vmatpush3.bf16.msra.mxu1 %v1219_v3  ;;  %v1235_v15 = vld [vmem:[%s1290_s21 + $0x58] sm:$0xff]   ;;  %v1236_v17 = vld [vmem:[%s1290_s21 + $0x60] sm:$0xff]   ;;  %v1237_v19 = vld [vmem:[%s1290_s21 + $0x68] sm:$0xff]  }
  0x14   : > { %1152 = vmatprep.subr.bf16.mxu0 %v1220_v5  ;;  %1196 = vmatprep.subr.bf16.mxu1 %v1220_v5  ;;  %v1230_v20 = vld [vmem:[%s1290_s21 + $0x30] sm:$0xff]   ;;  %v1231_v22 = vld [vmem:[%s1290_s21 + $0x38] sm:$0xff]  }
  0x15   : > { %v1238_v21 = vld [vmem:[%s1290_s21 + $0x70] sm:$0xff]   ;;  %v1239_v23 = vld [vmem:[%s1290_s21 + $0x78] sm:$0xff]  }
  0x17   : > { %1153 = vmatpush3.bf16.msra.mxu0 %v1220_v5  ;;  %1204 = vmatpush3.bf16.msra.mxu1 %v1220_v5 }
  0x18   : > { %1154 = vmatprep.subr.bf16.mxu0 %v1221_v6  ;;  %1197 = vmatprep.subr.bf16.mxu1 %v1221_v6 }
  0x1b   : > { %1155 = vmatpush3.bf16.msra.mxu0 %v1221_v6  ;;  %1205 = vmatpush3.bf16.msra.mxu1 %v1221_v6 }
  0x1c   : > { %1156 = vmatprep.subr.bf16.mxu0 %v1222_v8  ;;  %1198 = vmatprep.subr.bf16.mxu1 %v1222_v8 }
  0x1f   : > { %1157 = vmatpush3.bf16.msra.mxu0 %v1222_v8  ;;  %1206 = vmatpush3.bf16.msra.mxu1 %v1222_v8 }
  0x20   : > { %1158 = vmatprep.subr.bf16.mxu0 %v1223_v9  ;;  %1199 = vmatprep.subr.bf16.mxu1 %v1223_v9 }
  0x23   : > { %1159 = vmatpush3.bf16.msra.mxu0 %v1223_v9  ;;  %1207 = vmatpush3.bf16.msra.mxu1 %v1223_v9 }
  0x26   : > { %1161 = vmatmul.mubr.bf16.vlgmr.msra.gmra.mrb[0].mxu0 %v1225_v10  ;;  %1177 = vmatmul.mubr.bf16.vlgmr.msra.gmra.mrb[0].mxu1 %v1233_v11 }
  0x27   : > { %1164 = vmatprep.mubr.bf16.mxu0 %v1226_v12  ;;  %1180 = vmatprep.mubr.bf16.mxu1 %v1234_v13 }
  0x2e   : > { %1165 = vmatmul.mubr.bf16.gmra.mrb[4].mxu0 %v1227_v14  ;;  %1181 = vmatmul.mubr.bf16.gmra.mrb[4].mxu1 %v1235_v15 }
  0x2f   : > { %1168 = vmatprep.mubr.bf16.mxu0 %v1228_v16  ;;  %1184 = vmatprep.mubr.bf16.mxu1 %v1236_v17 }
  0x36   : > { %1169 = vmatmul.mubr.bf16.gmra.mrb[8].mxu0 %v1229_v18  ;;  %1185 = vmatmul.mubr.bf16.gmra.mrb[8].mxu1 %v1237_v19 }
  0x37   : > { %1172 = vmatprep.mubr.bf16.mxu0 %v1230_v20  ;;  %1188 = vmatprep.mubr.bf16.mxu1 %v1238_v21 }
  0x3e   : > { %1173 = vmatmul.mubr.bf16.gmra.mrb[12].mxu0 %v1231_v22  ;;  %1189 = vmatmul.mubr.bf16.gmra.mrb[12].mxu1 %v1239_v23 }
  0xf9   : > { %v1323_v24 = vpop.f32.mrb[0].mxu0  ;;  %v1325_v25 = vpop.f32.mrb[0].mxu1 }
  0xfa   : > { %v1327_v26 = vpop.f32.mrb[1].mxu0  ;;  %v1329_v27 = vpop.f32.mrb[1].mxu1  ;;  %v541_v35 = vmul.f32 %v1323_v24, %v1323_v24 }
  0xfb   : > { %v1331_v28 = vpop.f32.mrb[2].mxu0  ;;  %v1333_v29 = vpop.f32.mrb[2].mxu1  ;;  %v539_v32 = vmul.f32 %v1327_v26, %v1327_v26 }
  0xfc   : > { %v1335_v30 = vpop.f32.mrb[3].mxu0  ;;  %v1337_v31 = vpop.f32.mrb[3].mxu1  ;;  %v542_v38 = vmul.f32 %v1331_v28, %v1331_v28 }
  0xfd   : > { %v501_v33 = vadd.f32 %v1335_v30, %v1327_v26  ;;  %v540_v34 = vmul.f32 %v1335_v30, %v1335_v30 }
  0xff   : > { %v502_v36 = vadd.f32 %v1323_v24, %v501_v33  ;;  %v571_v37 = vadd.f32 %v540_v34, %v539_v32 }
 0x101   : > { %v572_v39 = vadd.f32 %v571_v37, %v541_v35  ;;  %v1350_v40 = vpop.f32.mrb[4].mxu0  ;;  %v503_v41 = vadd.f32 %v1331_v28, %v502_v36  ;;  %v1353_v42 = vpop.f32.mrb[4].mxu1 }
 0x102   : > { %v1355_v43 = vpop.f32.mrb[5].mxu0  ;;  %v1357_v44 = vpop.f32.mrb[5].mxu1  ;;  %v545_v55 = vmul.f32 %v1350_v40, %v1350_v40 }
 0x103   : > { %v504_v45 = vadd.f32 %v503_v41, %v1355_v43  ;;  %v543_v46 = vmul.f32 %v1355_v43, %v1355_v43  ;;  %v573_v47 = vadd.f32 %v572_v39, %v542_v38  ;;  %v1362_v48 = vpop.f32.mrb[6].mxu0  ;;  %v1364_v49 = vpop.f32.mrb[6].mxu1 }
 0x104   : > { %v1366_v50 = vpop.f32.mrb[7].mxu0  ;;  %v1368_v51 = vpop.f32.mrb[7].mxu1  ;;  %v546_v58 = vmul.f32 %v1362_v48, %v1362_v48 }
 0x105   : > { %v574_v52 = vadd.f32 %v573_v47, %v543_v46  ;;  %v505_v53 = vadd.f32 %v504_v45, %v1366_v50  ;;  %v544_v54 = vmul.f32 %v1366_v50, %v1366_v50 }
 0x107   : > { %v506_v56 = vadd.f32 %v1350_v40, %v505_v53  ;;  %v575_v57 = vadd.f32 %v574_v52, %v544_v54  ;;  %v555_v53 = vmul.f32 %v1329_v27, %v1329_v27 }
 0x109   : > { %v576_v59 = vadd.f32 %v575_v57, %v545_v55  ;;  %v1378_v60 = vpop.f32.mrb[8].mxu0  ;;  %v507_v61 = vadd.f32 %v1362_v48, %v506_v56  ;;  %v1381_v62 = vpop.f32.mrb[8].mxu1 }
 0x10a   : > { %v1383_v63 = vpop.f32.mrb[9].mxu0  ;;  %v1385_v0 = vpop.f32.mrb[9].mxu1  ;;  %v549_v11 = vmul.f32 %v1378_v60, %v1378_v60 }
 0x10b   : > { %v508_v1 = vadd.f32 %v507_v61, %v1383_v63  ;;  %v547_v2 = vmul.f32 %v1383_v63, %v1383_v63  ;;  %v577_v3 = vadd.f32 %v576_v59, %v546_v58  ;;  %v1390_v4 = vpop.f32.mrb[10].mxu0  ;;  %v1392_v5 = vpop.f32.mrb[10].mxu1  ;;  %v556_v58 = vmul.f32 %v1337_v31, %v1337_v31 }
 0x10c   : > { %v1394_v6 = vpop.f32.mrb[11].mxu0  ;;  %v1396_v7 = vpop.f32.mrb[11].mxu1  ;;  %v550_v14 = vmul.f32 %v1390_v4, %v1390_v4  ;;  %v557_v59 = vmul.f32 %v1325_v25, %v1325_v25 }
 0x10d   : > { %v578_v8 = vadd.f32 %v577_v3, %v547_v2  ;;  %v509_v9 = vadd.f32 %v508_v1, %v1394_v6  ;;  %v548_v10 = vmul.f32 %v1394_v6, %v1394_v6  ;;  %v558_v2 = vmul.f32 %v1333_v29, %v1333_v29 }
 0x10f   : > { %v510_v12 = vadd.f32 %v1378_v60, %v509_v9  ;;  %v579_v13 = vadd.f32 %v578_v8, %v548_v10  ;;  %v559_v9 = vmul.f32 %v1357_v44, %v1357_v44 }
 0x111   : > { %v580_v15 = vadd.f32 %v579_v13, %v549_v11  ;;  %v1406_v16 = vpop.f32.mrb[12].mxu0  ;;  %v511_v17 = vadd.f32 %v1390_v4, %v510_v12  ;;  %v1409_v18 = vpop.f32.mrb[12].mxu1 }
 0x112   : > { %v1411_v19 = vpop.f32.mrb[13].mxu0  ;;  %v1413_v20 = vpop.f32.mrb[13].mxu1  ;;  %v553_v39 = vmul.f32 %v1406_v16, %v1406_v16 }
 0x113   : > { %v512_v21 = vadd.f32 %v511_v17, %v1411_v19  ;;  %v551_v22 = vmul.f32 %v1411_v19, %v1411_v19  ;;  %v581_v23 = vadd.f32 %v580_v15, %v550_v14  ;;  %v1418_v32 = vpop.f32.mrb[14].mxu0  ;;  %v1420_v33 = vpop.f32.mrb[14].mxu1  ;;  %v560_v14 = vmul.f32 %v1368_v51, %v1368_v51 }
 0x114   : > { %v1422_v34 = vpop.f32.mrb[15].mxu0  ;;  %v1424_v35 = vpop.f32.mrb[15].mxu1  ;;  %v554_v46 = vmul.f32 %v1418_v32, %v1418_v32  ;;  %v561_v15 = vmul.f32 %v1353_v42, %v1353_v42 }
 0x115   : > { %v582_v36 = vadd.f32 %v581_v23, %v551_v22  ;;  %v513_v37 = vadd.f32 %v512_v21, %v1422_v34  ;;  %v552_v38 = vmul.f32 %v1422_v34, %v1422_v34  ;;  %v562_v22 = vmul.f32 %v1364_v49, %v1364_v49 }
 0x117   : > { %v514_v41 = vadd.f32 %v1406_v16, %v513_v37  ;;  %v583_v45 = vadd.f32 %v582_v36, %v552_v38  ;;  %v563_v37 = vmul.f32 %v1385_v0, %v1385_v0 }
 0x119   : > { %v584_v47 = vadd.f32 %v583_v45, %v553_v39  ;;  %v515_v52 = vadd.f32 %v1418_v32, %v514_v41 }
 0x11b   : > { %v516_v54 = vadd.f32 %v515_v52, %v1329_v27  ;;  %v585_v55 = vadd.f32 %v584_v47, %v554_v46  ;;  %v564_v46 = vmul.f32 %v1396_v7, %v1396_v7  ;;  %v565_v47 = vmul.f32 %v1381_v62, %v1381_v62 }
 0x11d   : > { %v586_v56 = vadd.f32 %v585_v55, %v555_v53  ;;  %v517_v57 = vadd.f32 %v516_v54, %v1337_v31  ;;  %v566_v54 = vmul.f32 %v1392_v5, %v1392_v5 }
 0x11f   : > { %v518_v61 = vadd.f32 %v1325_v25, %v517_v57  ;;  %v587_v1 = vadd.f32 %v586_v56, %v556_v58  ;;  %v567_v57 = vmul.f32 %v1413_v20, %v1413_v20 }
 0x121   : > { %v588_v3 = vadd.f32 %v587_v1, %v557_v59  ;;  %v519_v8 = vadd.f32 %v1333_v29, %v518_v61 }
 0x123   : > { %v520_v10 = vadd.f32 %v519_v8, %v1357_v44  ;;  %v589_v11 = vadd.f32 %v588_v3, %v558_v2  ;;  %v568_v2 = vmul.f32 %v1424_v35, %v1424_v35  ;;  %v569_v3 = vmul.f32 %v1409_v18, %v1409_v18 }
 0x125   : > { %v590_v12 = vadd.f32 %v589_v11, %v559_v9  ;;  %v521_v13 = vadd.f32 %v520_v10, %v1368_v51  ;;  %v570_v10 = vmul.f32 %v1420_v33, %v1420_v33 }
 0x127   : > { %v522_v17 = vadd.f32 %v1353_v42, %v521_v13  ;;  %v591_v21 = vadd.f32 %v590_v12, %v560_v14 }
 0x129   : > { %v592_v23 = vadd.f32 %v591_v21, %v561_v15  ;;  %v523_v36 = vadd.f32 %v1364_v49, %v522_v17 }
 0x12b   : > { %v524_v38 = vadd.f32 %v523_v36, %v1385_v0  ;;  %v593_v39 = vadd.f32 %v592_v23, %v562_v22 }
 0x12d   : > { %v594_v41 = vadd.f32 %v593_v39, %v563_v37  ;;  %v525_v45 = vadd.f32 %v524_v38, %v1396_v7 }
 0x12f   : > { %v526_v52 = vadd.f32 %v1381_v62, %v525_v45  ;;  %v595_v53 = vadd.f32 %v594_v41, %v564_v46 }
 0x131   : > { %v596_v55 = vadd.f32 %v595_v53, %v565_v47  ;;  %v527_v56 = vadd.f32 %v1392_v5, %v526_v52 }
 0x133   : > { %v528_v58 = vadd.f32 %v527_v56, %v1413_v20  ;;  %v597_v59 = vadd.f32 %v596_v55, %v566_v54 }
 0x135   : > { %v598_v61 = vadd.f32 %v597_v59, %v567_v57  ;;  %v529_v1 = vadd.f32 %v528_v58, %v1424_v35 }
 0x137   : > { %v530_v8 = vadd.f32 %v1409_v18, %v529_v1  ;;  %v599_v9 = vadd.f32 %v598_v61, %v568_v2 }
 0x139   : > { %v531_v11 = vadd.f32 %v1420_v33, %v530_v8  ;;  %v600_v12 = vadd.f32 %v599_v9, %v569_v3 }
 0x13b   : > { %v532_v13 = vrot.slane %v531_v11, 4  ;;  %v601_v14 = vadd.f32 %v600_v12, %v570_v10 }
 0x13d   : > { %v533_v15 = vadd.f32 %v532_v13, %v531_v11  ;;  %v602_v17 = vrot.slane %v601_v14, 4 }
 0x13f   : > { %v534_v21 = vrot.slane %v533_v15, 2  ;;  %v603_v22 = vadd.f32 %v602_v17, %v601_v14 }
 0x141   : > { %v535_v23 = vadd.f32 %v534_v21, %v533_v15  ;;  %v604_v36 = vrot.slane %v603_v22, 2 }
 0x143   : > { %v536_v37 = vrot.slane %v535_v23, 1  ;;  %v605_v38 = vadd.f32 %v604_v36, %v603_v22 }
 0x145   : > { %v537_v39 = vadd.f32 %v536_v37, %v535_v23  ;;  %v606_v41 = vrot.slane %v605_v38, 1 }
 0x147   : > { %v1483_v45 = vmul.f32 0.00390625, %v537_v39  ;;  %v607_v46 = vadd.f32 %v606_v41, %v605_v38 }
 0x149   : > { %v608_v47 = vmul.f32 0.00390625, %v607_v46  ;;  %v609_v52 = vmul.f32 %v1483_v45, %v1483_v45  ;;  %v612_v53 = vsub.f32 %v1327_v26, %v1483_v45  ;;  %v613_v54 = vsub.f32 %v1335_v30, %v1483_v45 }
 0x14a   : > { %v614_v55 = vsub.f32 %v1323_v24, %v1483_v45  ;;  %v615_v56 = vsub.f32 %v1331_v28, %v1483_v45  ;;  %v616_v57 = vsub.f32 %v1355_v43, %v1483_v45  ;;  %v617_v58 = vsub.f32 %v1366_v50, %v1483_v45 }
 0x14b   : > { %v610_v59 = vsub.f32 %v608_v47, %v609_v52  ;;  %v618_v61 = vsub.f32 %v1350_v40, %v1483_v45  ;;  %v619_v26 = vsub.f32 %v1362_v48, %v1483_v45  ;;  %v620_v30 = vsub.f32 %v1383_v63, %v1483_v45 }
 0x14c   : > { %v621_v24 = vsub.f32 %v1394_v6, %v1483_v45  ;;  %v622_v28 = vsub.f32 %v1378_v60, %v1483_v45  ;;  %v623_v43 = vsub.f32 %v1390_v4, %v1483_v45  ;;  %v624_v50 = vsub.f32 %v1411_v19, %v1483_v45 }
 0x14d   : > { %v611_v1 = vmax.f32 %v610_v59, 0.0  ;;  %v625_v40 = vsub.f32 %v1422_v34, %v1483_v45  ;;  %v626_v48 = vsub.f32 %v1406_v16, %v1483_v45  ;;  %v627_v63 = vsub.f32 %v1418_v32, %v1483_v45 }
 0x14e   : > { %v628_v6 = vsub.f32 %v1329_v27, %v1483_v45  ;;  %v629_v60 = vsub.f32 %v1337_v31, %v1483_v45  ;;  %v630_v4 = vsub.f32 %v1325_v25, %v1483_v45  ;;  %v631_v19 = vsub.f32 %v1333_v29, %v1483_v45 }
 0x14f   : > { %v632_v34 = vsub.f32 %v1357_v44, %v1483_v45  ;;  %v633_v16 = vsub.f32 %v1368_v51, %v1483_v45  ;;  %v634_v32 = vsub.f32 %v1353_v42, %v1483_v45  ;;  %v635_v27 = vsub.f32 %v1364_v49, %v1483_v45 }
 0x150   : > { %v636_v31 = vsub.f32 %v1385_v0, %v1483_v45  ;;  %v637_v25 = vsub.f32 %v1396_v7, %v1483_v45  ;;  %v638_v29 = vsub.f32 %v1381_v62, %v1483_v45  ;;  %v639_v44 = vsub.f32 %v1392_v5, %v1483_v45 }
 0x151   : > { %v640_v51 = vsub.f32 %v1413_v20, %v1483_v45  ;;  %v641_v42 = vsub.f32 %v1424_v35, %v1483_v45  ;;  %v642_v49 = vsub.f32 %v1409_v18, %v1483_v45  ;;  %v643_v0 = vsub.f32 %v1420_v33, %v1483_v45 }
 0x152   : > { %v644_v2 = vadd.f32 1e-05, %v611_v1 }
 0x154   : > { %1240 = vrsqrt.f32 %v644_v2 }
 0x15e   : > { %v1241_v7 = vpop.eup %1240 }
 0x15f   : > { %v1551_v3 = vmul.f32 %v1241_v7, %v612_v53  ;;  %v1553_v62 = vmul.f32 %v1241_v7, %v613_v54  ;;  %v1555_v5 = vmul.f32 %v1241_v7, %v614_v55  ;;  %v1557_v8 = vmul.f32 %v1241_v7, %v615_v56 }
 0x160   : > { %v1559_v20 = vmul.f32 %v1241_v7, %v616_v57  ;;  %v1561_v35 = vmul.f32 %v1241_v7, %v617_v58  ;;  %v1563_v9 = vmul.f32 %v1241_v7, %v618_v61  ;;  %v653_v18 = vmul.f32 %v1241_v7, %v619_v26 }
 0x161   : > { %v654_v10 = vmul.f32 %v1241_v7, %v620_v30  ;;  %v655_v33 = vmul.f32 %v1241_v7, %v621_v24  ;;  %v656_v11 = vmul.f32 %v1241_v7, %v622_v28  ;;  %v657_v12 = vmul.f32 %v1241_v7, %v623_v43 }
 0x162   : > { %v658_v13 = vmul.f32 %v1241_v7, %v624_v50  ;;  %v659_v14 = vmul.f32 %v1241_v7, %v625_v40  ;;  %v660_v15 = vmul.f32 %v1241_v7, %v626_v48  ;;  %v661_v17 = vmul.f32 %v1241_v7, %v627_v63 }
 0x163   : > { %v662_v21 = vmul.f32 %v1241_v7, %v628_v6  ;;  %v663_v22 = vmul.f32 %v1241_v7, %v629_v60  ;;  %v664_v23 = vmul.f32 %v1241_v7, %v630_v4  ;;  %v665_v36 = vmul.f32 %v1241_v7, %v631_v19 }
 0x164   : > { %v666_v37 = vmul.f32 %v1241_v7, %v632_v34  ;;  %v667_v38 = vmul.f32 %v1241_v7, %v633_v16  ;;  %v668_v39 = vmul.f32 %v1241_v7, %v634_v32  ;;  %v669_v41 = vmul.f32 %v1241_v7, %v635_v27 }
 0x165   : > { %v670_v45 = vmul.f32 %v1241_v7, %v636_v31  ;;  %v671_v46 = vmul.f32 %v1241_v7, %v637_v25  ;;  %v672_v47 = vmul.f32 %v1241_v7, %v638_v29  ;;  %v673_v52 = vmul.f32 %v1241_v7, %v639_v44 }
 0x166   : > { %v674_v53 = vmul.f32 %v1241_v7, %v640_v51  ;;  %v675_v54 = vmul.f32 %v1241_v7, %v641_v42  ;;  %v676_v55 = vmul.f32 %v1241_v7, %v642_v49  ;;  %v677_v56 = vmul.f32 %v1241_v7, %v643_v0 }
 0x167   : > { %v678_v57 = vmax.f32 %v1551_v3, 0.0  ;;  %v679_v58 = vmax.f32 %v1553_v62, 0.0  ;;  %v680_v59 = vmax.f32 %v1555_v5, 0.0  ;;  %v681_v61 = vmax.f32 %v1557_v8, 0.0 }
 0x168   : > { %v682_v26 = vmax.f32 %v1559_v20, 0.0  ;;  %v683_v30 = vmax.f32 %v1561_v35, 0.0  ;;  %v684_v24 = vmax.f32 %v1563_v9, 0.0  ;;  %v685_v28 = vmax.f32 %v653_v18, 0.0 }
 0x169   : > { %v686_v43 = vmax.f32 %v654_v10, 0.0  ;;  %v687_v50 = vmax.f32 %v655_v33, 0.0  ;;  %v688_v1 = vmax.f32 %v656_v11, 0.0  ;;  %v689_v40 = vmax.f32 %v657_v12, 0.0 }
 0x16a   : > { %v690_v48 = vmax.f32 %v658_v13, 0.0  ;;  %v691_v63 = vmax.f32 %v659_v14, 0.0  ;;  %v692_v6 = vmax.f32 %v660_v15, 0.0  ;;  %v693_v60 = vmax.f32 %v661_v17, 0.0 }
 0x16b   : > { %v694_v4 = vmax.f32 %v662_v21, 0.0  ;;  %v695_v19 = vmax.f32 %v663_v22, 0.0  ;;  %v696_v34 = vmax.f32 %v664_v23, 0.0  ;;  %v697_v16 = vmax.f32 %v665_v36, 0.0 }
 0x16c   : > { %v698_v32 = vmax.f32 %v666_v37, 0.0  ;;  %v699_v27 = vmax.f32 %v667_v38, 0.0  ;;  %v700_v31 = vmax.f32 %v668_v39, 0.0  ;;  %v701_v25 = vmax.f32 %v669_v41, 0.0 }
 0x16d   : > { %v702_v29 = vmax.f32 %v670_v45, 0.0  ;;  %v703_v44 = vmax.f32 %v671_v46, 0.0  ;;  %v704_v51 = vmax.f32 %v672_v47, 0.0  ;;  %v705_v42 = vmax.f32 %v673_v52, 0.0 }
 0x16e   : > { %v706_v49 = vmax.f32 %v674_v53, 0.0  ;;  %v707_v0 = vmax.f32 %v675_v54, 0.0  ;;  %v708_v2 = vmax.f32 %v676_v55, 0.0  ;;  %v709_v7 = vmax.f32 %v677_v56, 0.0 }
 0x16f   : > { %v1028_v3 = vpack.c.bf16 %v679_v58, %v678_v57  ;;  %v1033_v62 = vpack.c.bf16 %v681_v61, %v680_v59  ;;  %v1038_v5 = vpack.c.bf16 %v683_v30, %v682_v26  ;;  %v1043_v8 = vpack.c.bf16 %v685_v28, %v684_v24 }
 0x170   : > { %v1048_v20 = vpack.c.bf16 %v687_v50, %v686_v43  ;;  %v1053_v35 = vpack.c.bf16 %v689_v40, %v688_v1  ;;  %v1058_v9 = vpack.c.bf16 %v691_v63, %v690_v48  ;;  %v1063_v18 = vpack.c.bf16 %v693_v60, %v692_v6 }
 0x171   : > { %1029 = vst [vmem:[%s1577_s6] sm:$0xff] %v1028_v3   ;;  %1105 = vst [vmem:[%s1577_s6 + $0x8] sm:$0xff] %v1033_v62   ;;  %v1068_v10 = vpack.c.bf16 %v695_v19, %v694_v4  ;;  %v1073_v33 = vpack.c.bf16 %v697_v16, %v696_v34  ;;  %v1078_v11 = vpack.c.bf16 %v699_v27, %v698_v32 }
 0x172   : > { %1106 = vst [vmem:[%s1577_s6 + $0x10] sm:$0xff] %v1038_v5   ;;  %1107 = vst [vmem:[%s1577_s6 + $0x18] sm:$0xff] %v1043_v8   ;;  %v1083_v12 = vpack.c.bf16 %v701_v25, %v700_v31  ;;  %v1088_v13 = vpack.c.bf16 %v703_v44, %v702_v29  ;;  %v1093_v14 = vpack.c.bf16 %v705_v42, %v704_v51 }
 0x173   : > { %1108 = vst [vmem:[%s1577_s6 + $0x20] sm:$0xff] %v1048_v20   ;;  %1109 = vst [vmem:[%s1577_s6 + $0x28] sm:$0xff] %v1053_v35   ;;  %v1098_v15 = vpack.c.bf16 %v707_v0, %v706_v49  ;;  %v1103_v17 = vpack.c.bf16 %v709_v7, %v708_v2 }
 0x174   : > { %1110 = vst [vmem:[%s1577_s6 + $0x30] sm:$0xff] %v1058_v9   ;;  %1111 = vst [vmem:[%s1577_s6 + $0x38] sm:$0xff] %v1063_v18  }
 0x175   : > { %1112 = vst [vmem:[%s1577_s6 + $0x40] sm:$0xff] %v1068_v10   ;;  %1113 = vst [vmem:[%s1577_s6 + $0x48] sm:$0xff] %v1073_v33  }
 0x176   : > { %1114 = vst [vmem:[%s1577_s6 + $0x50] sm:$0xff] %v1078_v11   ;;  %1115 = vst [vmem:[%s1577_s6 + $0x58] sm:$0xff] %v1083_v12  }
 0x177   : > { %1116 = vst [vmem:[%s1577_s6 + $0x60] sm:$0xff] %v1088_v13   ;;  %1117 = vst [vmem:[%s1577_s6 + $0x68] sm:$0xff] %v1093_v14  }
 0x178   : > { %1118 = vst [vmem:[%s1577_s6 + $0x70] sm:$0xff] %v1098_v15   ;;  %1119 = vst [vmem:[%s1577_s6 + $0x78] sm:$0xff] %v1103_v17  }
 0x179 PF: > { %s12_s9 = sadd.s32 1, %s1248_s9  }
 0x17a   : > { %p9_p4 = scmp.ge.s32.totalorder %s12_s9, 4  }
 0x17c   :  { %11 = sbr.rel (!%p9_p4) target bundleno = 1 (0x1), region = 58 }

// kernel: critic_forward.4
= control target key start
LH: loop header
LB: loop body
LE: loop exit
PB: predicated region body
PF: predicated region fallthrough
CT: control target
= control target key end

     0   :  { %s629_s9 = smov 0   ;;  %s689_s0 = inlined_call_operand.vmem [shape: bf16[128,128], index: 0, kind: input, shape index: {}]   ;;  %s690_s1 = inlined_call_operand.vmem [shape: bf16[128,128], index: 1, kind: input, shape index: {}]   ;;  %s691_s2 = inlined_call_operand.vmem [shape: bf16[128,128], index: 2, kind: output, shape index: {}]  }
   0x1 LB: > { %s470_s10 = sadd.s32 4294967295, %s612_s9   ;;  %p474_p0 = scmp.ge.s32.totalorder %s612_s9, 1  ;;  %s612_s9 = sphi %s629_s9, %s12_s9  }
   0x2   : > { %p113_p1 = scmp.lt.s32.totalorder %s612_s9, 3 }
   0x4   : > { %p114_p2 = pnand %p474_p0, %p113_p1 }
   0x5   : > { %v592_v0 = vld [vmem:[%s690_s1] sm:$0xff] (!%p114_p2)   ;;  %s475_s13 = sshll.u32 (!%p114_p2), %s470_s10, 3  ;;  %v593_v1 = vld [vmem:[%s690_s1 + $0x8] sm:$0xff] (!%p114_p2)   ;;  %v594_v2 = vld [vmem:[%s690_s1 + $0x10] sm:$0xff] (!%p114_p2)  }
   0x6   : > { %117 = sbr.rel (%p114_p2) target bundleno = 308 (0x134), region = 28  ;;  %p136_p3 = scmp.lt.s32.totalorder (!%p114_p2), %s475_s13, 15  ;;  %544 = vmatprep.subr.bf16.mxu0 (!%p114_p2), %v592_v0  ;;  %568 = vmatprep.subr.bf16.mxu1 (!%p114_p2), %v592_v0  ;;  %v595_v3 = vld [vmem:[%s690_s1 + $0x18] sm:$0xff] (!%p114_p2)   ;;  %v596_v6 = vld [vmem:[%s690_s1 + $0x20] sm:$0xff] (!%p114_p2)   ;;  %v597_v7 = vld [vmem:[%s690_s1 + $0x28] sm:$0xff] (!%p114_p2)  }
   0x7   : > { %545 = vmatpush3.bf16.msra.mxu0 (!%p114_p2), %v592_v0  ;;  %576 = vmatpush3.bf16.msra.mxu1 (!%p114_p2), %v592_v0  ;;  %v598_v8 = vld [vmem:[%s690_s1 + $0x30] sm:$0xff] (!%p114_p2)   ;;  %v599_v9 = vld [vmem:[%s690_s1 + $0x38] sm:$0xff] (!%p114_p2)  }
   0x8   : > { %546 = vmatprep.subr.bf16.mxu0 (!%p114_p2), %v593_v1  ;;  %569 = vmatprep.subr.bf16.mxu1 (!%p114_p2), %v593_v1 }
   0xb   : > { %547 = vmatpush3.bf16.msra.mxu0 (!%p114_p2), %v593_v1  ;;  %577 = vmatpush3.bf16.msra.mxu1 (!%p114_p2), %v593_v1 }
   0xc   : > { %548 = vmatprep.subr.bf16.mxu0 (!%p114_p2), %v594_v2  ;;  %570 = vmatprep.subr.bf16.mxu1 (!%p114_p2), %v594_v2 }
   0xd   : > { %s693_s13 = smov (!%p136_p3, %s475_s13), 15 }
   0xe   : > { %s476_s18 = sshll.u32 %s693_s13, 2 }
   0xf   : > { %s654_s21 = scalar_lea.vmem %s689_s0, %s476_s18  ;;  %549 = vmatpush3.bf16.msra.mxu0 %v594_v2  ;;  %578 = vmatpush3.bf16.msra.mxu1 %v594_v2  ;;  %s145_s6 = scalar_lea.vmem %s691_s2, %s476_s18 }
  0x10   : > { %v600_v4 = vld [vmem:[%s654_s21] sm:$0xff]   ;;  %v602_v5 = vld [vmem:[%s654_s21 + $0x10] sm:$0xff]   ;;  %550 = vmatprep.subr.bf16.mxu0 %v595_v3  ;;  %571 = vmatprep.subr.bf16.mxu1 %v595_v3  ;;  %v601_v10 = vld [vmem:[%s654_s21 + $0x8] sm:$0xff]  }
  0x11   : > { %560 = vmatprep.mubr.bf16.mxu0 %v600_v4  ;;  %564 = vmatprep.mubr.bf16.mxu1 %v602_v5  ;;  %v603_v11 = vld [vmem:[%s654_s21 + $0x18] sm:$0xff]  }
  0x13   : > { %551 = vmatpush3.bf16.msra.mxu0 %v595_v3  ;;  %579 = vmatpush3.bf16.msra.mxu1 %v595_v3 }
  0x14   : > { %552 = vmatprep.subr.bf16.mxu0 %v596_v6  ;;  %572 = vmatprep.subr.bf16.mxu1 %v596_v6 }
  0x17   : > { %553 = vmatpush3.bf16.msra.mxu0 %v596_v6  ;;  %580 = vmatpush3.bf16.msra.mxu1 %v596_v6 }
  0x18   : > { %554 = vmatprep.subr.bf16.mxu0 %v597_v7  ;;  %573 = vmatprep.subr.bf16.mxu1 %v597_v7 }
  0x1b   : > { %555 = vmatpush3.bf16.msra.mxu0 %v597_v7  ;;  %581 = vmatpush3.bf16.msra.mxu1 %v597_v7 }
  0x1c   : > { %556 = vmatprep.subr.bf16.mxu0 %v598_v8  ;;  %574 = vmatprep.subr.bf16.mxu1 %v598_v8 }
  0x1f   : > { %557 = vmatpush3.bf16.msra.mxu0 %v598_v8  ;;  %582 = vmatpush3.bf16.msra.mxu1 %v598_v8 }
  0x20   : > { %558 = vmatprep.subr.bf16.mxu0 %v599_v9  ;;  %575 = vmatprep.subr.bf16.mxu1 %v599_v9 }
  0x23   : > { %559 = vmatpush3.bf16.msra.mxu0 %v599_v9  ;;  %583 = vmatpush3.bf16.msra.mxu1 %v599_v9 }
  0x26   : > { %561 = vmatmul.mubr.bf16.vlgmr.msra.gmra.mrb[0].mxu0 %v601_v10  ;;  %565 = vmatmul.mubr.bf16.vlgmr.msra.gmra.mrb[0].mxu1 %v603_v11 }
  0xf9   : > { %v562_v12 = vpop.f32.mrb[0].mxu0  ;;  %v675_v13 = vpop.f32.mrb[0].mxu1 }
  0xfa   : > { %v278_v14 = vpop.f32.mrb[1].mxu0  ;;  %v294_v15 = vpop.f32.mrb[1].mxu1  ;;  %v325_v23 = vmul.f32 %v562_v12, %v562_v12  ;;  %v329_v35 = vmul.f32 %v675_v13, %v675_v13 }
  0xfb   : > { %v563_v16 = vpop.f32.mrb[2].mxu0  ;;  %v567_v17 = vpop.f32.mrb[2].mxu1  ;;  %v323_v20 = vmul.f32 %v278_v14, %v278_v14  ;;  %v327_v29 = vmul.f32 %v294_v15, %v294_v15 }
  0xfc   : > { %v281_v18 = vpop.f32.mrb[3].mxu0  ;;  %v297_v19 = vpop.f32.mrb[3].mxu1  ;;  %v326_v26 = vmul.f32 %v563_v16, %v563_v16  ;;  %v330_v38 = vmul.f32 %v567_v17, %v567_v17 }
  0xfd   : > { %v309_v21 = vadd.f32 %v281_v18, %v278_v14  ;;  %v324_v22 = vmul.f32 %v281_v18, %v281_v18  ;;  %v328_v34 = vmul.f32 %v297_v19, %v297_v19 }
  0xff   : > { %v310_v24 = vadd.f32 %v562_v12, %v309_v21  ;;  %v331_v25 = vadd.f32 %v324_v22, %v323_v20 }
 0x101   : > { %v332_v27 = vadd.f32 %v331_v25, %v325_v23  ;;  %v311_v28 = vadd.f32 %v563_v16, %v310_v24 }
 0x103   : > { %v312_v30 = vadd.f32 %v311_v28, %v294_v15  ;;  %v333_v31 = vadd.f32 %v332_v27, %v326_v26 }
 0x105   : > { %v334_v32 = vadd.f32 %v333_v31, %v327_v29  ;;  %v313_v33 = vadd.f32 %v312_v30, %v297_v19 }
 0x107   : > { %v314_v36 = vadd.f32 %v675_v13, %v313_v33  ;;  %v335_v37 = vadd.f32 %v334_v32, %v328_v34 }
 0x109   : > { %v315_v39 = vadd.f32 %v567_v17, %v314_v36  ;;  %v336_v40 = vadd.f32 %v335_v37, %v329_v35 }
 0x10b   : > { %v316_v41 = vrot.slane %v315_v39, 4  ;;  %v337_v42 = vadd.f32 %v336_v40, %v330_v38 }
 0x10d   : > { %v317_v43 = vadd.f32 %v316_v41, %v315_v39  ;;  %v338_v44 = vrot.slane %v337_v42, 4 }
 0x10f   : > { %v318_v45 = vrot.slane %v317_v43, 2  ;;  %v339_v46 = vadd.f32 %v338_v44, %v337_v42 }
 0x111   : > { %v319_v47 = vadd.f32 %v318_v45, %v317_v43  ;;  %v340_v48 = vrot.slane %v339_v46, 2 }
 0x113   : > { %v320_v49 = vrot.slane %v319_v47, 1  ;;  %v341_v50 = vadd.f32 %v340_v48, %v339_v46 }
 0x115   : > { %v321_v51 = vadd.f32 %v320_v49, %v319_v47  ;;  %v342_v52 = vrot.slane %v341_v50, 1 }
 0x117   : > { %v322_v53 = vmul.f32 0.015625, %v321_v51  ;;  %v343_v54 = vadd.f32 %v342_v52, %v341_v50 }
 0x119   : > { %v344_v55 = vmul.f32 0.015625, %v343_v54  ;;  %v345_v56 = vmul.f32 %v322_v53, %v322_v53  ;;  %v348_v57 = vsub.f32 %v278_v14, %v322_v53  ;;  %v349_v58 = vsub.f32 %v281_v18, %v322_v53 }
 0x11a   : > { %v350_v59 = vsub.f32 %v562_v12, %v322_v53  ;;  %v351_v60 = vsub.f32 %v563_v16, %v322_v53  ;;  %v352_v61 = vsub.f32 %v294_v15, %v322_v53  ;;  %v353_v62 = vsub.f32 %v297_v19, %v322_v53 }
 0x11b   : > { %v346_v63 = vsub.f32 %v344_v55, %v345_v56  ;;  %v354_v0 = vsub.f32 %v675_v13, %v322_v53  ;;  %v355_v1 = vsub.f32 %v567_v17, %v322_v53 }
 0x11d   : > { %v347_v2 = vmax.f32 %v346_v63, 0.0 }
 0x11f   : > { %v356_v3 = vadd.f32 1e-05, %v347_v2 }
 0x121   : > { %604 = vrsqrt.f32 %v356_v3 }
 0x12b   : > { %v605_v4 = vpop.eup %604 }
 0x12c   : > { %v358_v5 = vmul.f32 %v605_v4, %v348_v57  ;;  %v359_v6 = vmul.f32 %v605_v4, %v349_v58  ;;  %v360_v7 = vmul.f32 %v605_v4, %v350_v59  ;;  %v361_v8 = vmul.f32 %v605_v4, %v351_v60 }
 0x12d   : > { %v362_v9 = vmul.f32 %v605_v4, %v352_v61  ;;  %v363_v10 = vmul.f32 %v605_v4, %v353_v62  ;;  %v364_v11 = vmul.f32 %v605_v4, %v354_v0  ;;  %v365_v12 = vmul.f32 %v605_v4, %v355_v1 }
 0x12e   : > { %v366_v14 = vmax.f32 %v358_v5, 0.0  ;;  %v367_v15 = vmax.f32 %v359_v6, 0.0  ;;  %v368_v16 = vmax.f32 %v360_v7, 0.0  ;;  %v369_v18 = vmax.f32 %v361_v8, 0.0 }
 0x12f   : > { %v370_v13 = vmax.f32 %v362_v9, 0.0  ;;  %v371_v17 = vmax.f32 %v363_v10, 0.0  ;;  %v372_v19 = vmax.f32 %v364_v11, 0.0  ;;  %v373_v20 = vmax.f32 %v365_v12, 0.0 }
 0x130   : > { %v512_v21 = vpack.c.bf16 %v367_v15, %v366_v14  ;;  %v517_v22 = vpack.c.bf16 %v369_v18, %v368_v16 }
 0x131   : > { %v522_v23 = vpack.c.bf16 %v371_v17, %v370_v13  ;;  %v527_v24 = vpack.c.bf16 %v373_v20, %v372_v19 }
 0x132   : > { %513 = vst [vmem:[%s145_s6] sm:$0xff] %v512_v21   ;;  %529 = vst [vmem:[%s145_s6 + $0x8] sm:$0xff] %v517_v22  }
 0x133   : > { %530 = vst [vmem:[%s145_s6 + $0x10] sm:$0xff] %v522_v23   ;;  %531 = vst [vmem:[%s145_s6 + $0x18] sm:$0xff] %v527_v24  }
 0x134 PF: > { %s12_s9 = sadd.s32 1, %s612_s9  }
 0x135   : > { %p9_p4 = scmp.ge.s32.totalorder %s12_s9, 4  }
 0x137   :  { %11 = sbr.rel (!%p9_p4) target bundleno = 1 (0x1), region = 58 }

// kernel: critic_forward.5
= control target key start
LH: loop header
LB: loop body
LE: loop exit
PB: predicated region body
PF: predicated region fallthrough
CT: control target
= control target key end

     0   :  { %s541_s9 = smov 0   ;;  %s610_s0 = inlined_call_operand.vmem [shape: bf16[32,256], index: 0, kind: input, shape index: {}]   ;;  %s611_s1 = inlined_call_operand.vmem [shape: bf16[256,128], index: 1, kind: input, shape index: {}]   ;;  %s612_s2 = inlined_call_operand.vmem [shape: bf16[32,128], index: 2, kind: output, shape index: {}]  }
   0x1 LB: > { %s427_s10 = sadd.s32 4294967295, %s524_s9   ;;  %p431_p0 = scmp.ge.s32.totalorder %s524_s9, 1  ;;  %s524_s9 = sphi %s541_s9, %s12_s9  }
   0x2   : > { %p114_p1 = scmp.lt.s32.totalorder %s524_s9, 3 }
   0x4   : > { %p115_p2 = pnand %p431_p0, %p114_p1 }
   0x5   : > { %v497_v0 = vld [vmem:[%s611_s1 + $0x40] sm:$0xff] (!%p115_p2)   ;;  %s432_s13 = sshll.u32 (!%p115_p2), %s427_s10, 1  ;;  %v499_v2 = vld [vmem:[%s611_s1 + $0x48] sm:$0xff] (!%p115_p2)   ;;  %v501_v4 = vld [vmem:[%s611_s1 + $0x50] sm:$0xff] (!%p115_p2)  }
   0x6   : > { %118 = sbr.rel (%p115_p2) target bundleno = 297 (0x129), region = 28  ;;  %v498_v1 = vld [vmem:[%s611_s1] sm:$0xff] (!%p115_p2)   ;;  %467 = vmatprep.subr.bf16.mxu0 (!%p115_p2), %v497_v0  ;;  %v500_v3 = vld [vmem:[%s611_s1 + $0x8] sm:$0xff] (!%p115_p2)   ;;  %p138_p3 = scmp.lt.s32.totalorder (!%p115_p2), %s432_s13, 3  ;;  %v502_v5 = vld [vmem:[%s611_s1 + $0x10] sm:$0xff] (!%p115_p2)  }
   0x7   : > { %468 = vmatpush3.bf16.msra.mxu0 (!%p115_p2), %v498_v1  ;;  %v503_v6 = vld [vmem:[%s611_s1 + $0x58] sm:$0xff] (!%p115_p2)   ;;  %v505_v8 = vld [vmem:[%s611_s1 + $0x60] sm:$0xff] (!%p115_p2)   ;;  %v507_v10 = vld [vmem:[%s611_s1 + $0x68] sm:$0xff] (!%p115_p2)  }
   0x8   : > { %469 = vmatprep.subr.bf16.mxu0 (!%p115_p2), %v499_v2  ;;  %v504_v7 = vld [vmem:[%s611_s1 + $0x18] sm:$0xff] (!%p115_p2)   ;;  %v506_v9 = vld [vmem:[%s611_s1 + $0x20] sm:$0xff] (!%p115_p2)   ;;  %v508_v12 = vld [vmem:[%s611_s1 + $0x28] sm:$0xff] (!%p115_p2)  }
   0x9   : > { %v509_v13 = vld [vmem:[%s611_s1 + $0x70] sm:$0xff] (!%p115_p2)   ;;  %v511_v15 = vld [vmem:[%s611_s1 + $0x78] sm:$0xff] (!%p115_p2)  }
   0xa   : > { %v510_v14 = vld [vmem:[%s611_s1 + $0x30] sm:$0xff] (!%p115_p2)   ;;  %v512_v16 = vld [vmem:[%s611_s1 + $0x38] sm:$0xff] (!%p115_p2)  }
   0xb   : > { %470 = vmatpush3.bf16.msra.mxu0 (!%p115_p2), %v500_v3 }
   0xc   : > { %471 = vmatprep.subr.bf16.mxu0 (!%p115_p2), %v501_v4 }
   0xd   : > { %s614_s13 = smov (!%p138_p3, %s432_s13), 3 }
   0xe   : > { %s459_s28 = sshll.u32 %s614_s13, 3  ;;  %s436_s22 = sshll.u32 %s614_s13, 2 }
   0xf   : > { %472 = vmatpush3.bf16.msra.mxu0 %v502_v5  ;;  %s142_s5 = scalar_lea.vmem %s610_s0, %s459_s28  ;;  %s148_s25 = scalar_lea.vmem %s612_s2, %s436_s22 }
  0x10   : > { %473 = vmatprep.subr.bf16.mxu0 %v503_v6  ;;  %v515_v11 = vld [vmem:[%s142_s5 + $0x4] ss:$8 sps:$4 sm:$0xff]   ;;  %v513_v17 = vld [vmem:[%s142_s5] ss:$8 sps:$4 sm:$0xff]  }
  0x11   : > { %323 = vmatprep.mubr.bf16.mxu0 %v515_v11 }
  0x13   : > { %474 = vmatpush3.bf16.msra.mxu0 %v504_v7 }
  0x14   : > { %475 = vmatprep.subr.bf16.mxu0 %v505_v8 }
  0x17   : > { %476 = vmatpush3.bf16.msra.mxu0 %v506_v9 }
  0x18   : > { %477 = vmatprep.subr.bf16.mxu0 %v507_v10 }
  0x1b   : > { %478 = vmatpush3.bf16.msra.mxu0 %v508_v12 }
  0x1c   : > { %479 = vmatprep.subr.bf16.mxu0 %v509_v13 }
  0x1f   : > { %480 = vmatpush3.bf16.msra.mxu0 %v510_v14 }
  0x20   : > { %481 = vmatprep.subr.bf16.mxu0 %v511_v15 }
  0x23   : > { %482 = vmatpush3.bf16.msra.mxu0 %v512_v16 }
  0x26   : > { %324 = vmatmul.mubr.bf16.vlgmr.msra.gmra.mrb[0].mxu0 %v513_v17 }
  0xf9   : > { %v483_v18 = vpop.f32.mrb[0].mxu0 }
  0xfa   : > { %v484_v19 = vpop.f32.mrb[1].mxu0 }
  0xfb   : > { %v485_v20 = vadd.f32 %v484_v19, %v483_v18  ;;  %v486_v21 = vpop.f32.mrb[2].mxu0 }
  0xfc   : > { %v487_v22 = vpop.f32.mrb[3].mxu0 }
  0xfd   : > { %v488_v23 = vadd.f32 %v487_v22, %v486_v21  ;;  %v340_v24 = vmul.f32 %v485_v20, %v485_v20 }
  0xff   : > { %v332_v25 = vadd.f32 %v488_v23, %v485_v20  ;;  %v341_v26 = vmul.f32 %v488_v23, %v488_v23 }
 0x101   : > { %v333_v27 = vrot.slane %v332_v25, 4  ;;  %v342_v28 = vadd.f32 %v341_v26, %v340_v24 }
 0x103   : > { %v334_v29 = vadd.f32 %v333_v27, %v332_v25  ;;  %v343_v30 = vrot.slane %v342_v28, 4 }
 0x105   : > { %v335_v31 = vrot.slane %v334_v29, 2  ;;  %v344_v32 = vadd.f32 %v343_v30, %v342_v28 }
 0x107   : > { %v336_v33 = vadd.f32 %v335_v31, %v334_v29  ;;  %v345_v34 = vrot.slane %v344_v32, 2 }
 0x109   : > { %v337_v35 = vrot.slane %v336_v33, 1  ;;  %v346_v36 = vadd.f32 %v345_v34, %v344_v32 }
 0x10b   : > { %v338_v37 = vadd.f32 %v337_v35, %v336_v33  ;;  %v347_v38 = vrot.slane %v346_v36, 1 }
 0x10d   : > { %v339_v39 = vmul.f32 0.0625, %v338_v37  ;;  %v348_v40 = vadd.f32 %v347_v38, %v346_v36 }
 0x10f   : > { %v349_v41 = vmul.f32 0.0625, %v348_v40  ;;  %v350_v42 = vmul.f32 %v339_v39, %v339_v39  ;;  %v353_v43 = vsub.f32 %v485_v20, %v339_v39  ;;  %v354_v44 = vsub.f32 %v488_v23, %v339_v39 }
 0x111   : > { %v351_v45 = vsub.f32 %v349_v41, %v350_v42 }
 0x113   : > { %v352_v46 = vmax.f32 %v351_v45, 0.0 }
 0x115   : > { %v355_v47 = vadd.f32 1e-05, %v352_v46 }
 0x117   : > { %516 = vrsqrt.f32 %v355_v47 }
 0x121   : > { %v517_v48 = vpop.eup %516 }
 0x122   : > { %v357_v49 = vmul.f32 %v517_v48, %v353_v43  ;;  %v358_v50 = vmul.f32 %v517_v48, %v354_v44 }
 0x124   : > { %v359_v51 = vmax.f32 %v357_v49, 0.0  ;;  %v360_v52 = vmax.f32 %v358_v50, 0.0 }
 0x126   : > { %v465_v53 = vpack.c.bf16 %v360_v52, %v359_v51 }
 0x128   : > { %466 = vst [vmem:[%s148_s25] sm:$0xff] %v465_v53  }
 0x129 PF: > { %s12_s9 = sadd.s32 1, %s524_s9  }
 0x12a   : > { %p9_p4 = scmp.ge.s32.totalorder %s12_s9, 4  }
 0x12c   :  { %11 = sbr.rel (!%p9_p4) target bundleno = 1 (0x1), region = 58 }

</bundles_post_ra>
